<compile_context>
chip_gen: v5e
topology: v5e:2x2
jax: 0.10.0
libtpu: 0.0.40
codegen_flags: <defaults>
</compile_context>

<pallas_src>
import functools

import jax
import jax.numpy as jnp
from jax import lax
from jax.experimental import pallas as pl
from jax.experimental.pallas import tpu as pltpu


def _round_up(x, m):
    return ((x + m - 1) // m) * m


def bert_embeddings_kernel(x_ref, w_ref, p_ref, o_ref, *, eps, hidden, hidden_padded):
    # x_ref: (TR, F)      token rows (original dtype; bf16 stays bf16 for the MXU)
    # w_ref: (Hp, F)      torch-layout Linear weight (contracted on F; no transpose)
    # p_ref: (3, Hp) f32  row 0 = linear bias, row 1 = LN gamma, row 2 = LN beta
    # o_ref: (TR, Hp)
    x = x_ref[...]
    w = w_ref[...]

    # Linear: contract x's F (axis 1) with w's F (axis 1) -> (TR, Hp), f32 accumulation.
    h = lax.dot_general(
        x, w,
        dimension_numbers=(((1,), (1,)), ((), ())),
        preferred_element_type=jnp.float32,
    )
    h = h + p_ref[0:1, :]

    inv_h = 1.0 / hidden
    if hidden_padded:
        # Padded hidden columns are exactly zero (zero-padded weight rows / bias),
        # so sum(h) over Hp == sum over H (mean is exact); mask the centered values
        # so the variance sum also only sees the true hidden columns.
        col = lax.broadcasted_iota(jnp.int32, (1, h.shape[-1]), 1)
        valid = (col < hidden).astype(jnp.float32)
        mean = jnp.sum(h, axis=-1, keepdims=True) * inv_h
        centered = (h - mean) * valid
    else:
        mean = jnp.sum(h, axis=-1, keepdims=True) * inv_h
        centered = h - mean
    var = jnp.sum(centered * centered, axis=-1, keepdims=True) * inv_h

    # Single-pass epilogue: normalize, scale, shift, one downcast store.
    out = centered * lax.rsqrt(var + eps) * p_ref[1:2, :] + p_ref[2:3, :]

    # Dropout: identity in eval/inference mode.
    # TODO(synk): training-mode dropout (pltpu.prng_seed + pltpu.prng_random_bits) not implemented.
    o_ref[...] = out.astype(o_ref.dtype)


def bert_embeddings(input_embeds, weight, bias, gamma, beta, *, eps=1e-12, row_tile=512):
    """Fused Linear -> LayerNorm -> Dropout(eval).

    input_embeds: (B, S, F); weight: (H, F) torch-style; bias/gamma/beta: (H,).
    """
    B, S, F = input_embeds.shape
    H = weight.shape[0]
    rows = B * S
    out_dtype = input_embeds.dtype

    # --- lane-dense hidden axis: pad H to a multiple of 128 (no-op when aligned) ---
    Hp = max(_round_up(H, 128), 128)
    hidden_padded = Hp != H
    if hidden_padded:
        weight = jnp.pad(weight, ((0, Hp - H), (0, 0)))
        bias = jnp.pad(bias, (0, Hp - H))
        gamma = jnp.pad(gamma, (0, Hp - H))
        beta = jnp.pad(beta, (0, Hp - H))

    # bias / LN gamma / LN beta stacked into one small resident operand (one DMA, one buffer).
    params = jnp.stack([bias, gamma, beta]).astype(jnp.float32)  # (3, Hp)

    # --- row tiling (multiple of 8); pad rows so the grid divides evenly ---
    tr = row_tile if rows >= row_tile else _round_up(rows, 8)
    rows_p = _round_up(rows, tr)

    x2d = input_embeds.reshape(rows, F)
    if rows_p != rows:
        x2d = jnp.pad(x2d, ((0, rows_p - rows), (0, 0)))

    grid = (rows_p // tr,)

    kernel = functools.partial(
        bert_embeddings_kernel, eps=eps, hidden=H, hidden_padded=hidden_padded)

    bytes_per = jnp.dtype(out_dtype).itemsize
    cost = pl.CostEstimate(
        flops=2 * rows_p * F * Hp,
        transcendentals=rows_p,  # one rsqrt per row
        bytes_accessed=rows_p * (F + Hp) * bytes_per + Hp * F * bytes_per + 3 * Hp * 4,
    )

    out2d = pl.pallas_call(
        kernel,
        out_shape=jax.ShapeDtypeStruct((rows_p, Hp), out_dtype),
        grid_spec=pltpu.PrefetchScalarGridSpec(
            num_scalar_prefetch=0,
            grid=grid,
            in_specs=[
                # x: streamed row tiles (double-buffered by the pipeline).
                # (On v7x, sweeping pipeline_mode=pl.Buffered(3) / larger TR can help further.)
                pl.BlockSpec((tr, F), lambda i: (i, 0)),
                # weight: resident across all grid steps.
                pl.BlockSpec((Hp, F), lambda i: (0, 0)),
                # stacked bias/gamma/beta: resident.
                pl.BlockSpec((3, Hp), lambda i: (0, 0)),
            ],
            out_specs=pl.BlockSpec((tr, Hp), lambda i: (i, 0)),
        ),
        compiler_params=pltpu.CompilerParams(
            dimension_semantics=("parallel",)),  # megacore-shardable row axis (v7x)
        cost_estimate=cost,
    )(x2d, weight, params)

    return out2d[:rows, :H].reshape(B, S, H)


if __name__ == "__main__":
    # Small shapes implied by the module: batch=2, seq=8, in_features=16, hidden=32
    B, S, F, H = 2, 8, 16, 32
    eps = 1e-12

    key = jax.random.PRNGKey(0)
    k_x, k_w, k_b, k_g, k_be = jax.random.split(key, 5)

    x = jax.random.normal(k_x, (B, S, F), dtype=jnp.float32)
    # Deterministic synthetic parameters (torch nn.Linear layout: (H, F))
    weight = jax.random.normal(k_w, (H, F), dtype=jnp.float32) * 0.02
    bias = jax.random.normal(k_b, (H,), dtype=jnp.float32) * 0.02
    gamma = jnp.ones((H,), dtype=jnp.float32)   # LayerNorm weight
    beta = jnp.zeros((H,), dtype=jnp.float32)   # LayerNorm bias

    out = bert_embeddings(x, weight, bias, gamma, beta, eps=eps)
    jax.block_until_ready(out)

    # Pure-JAX reference check
    ref = x @ weight.T + bias
    mu = ref.mean(-1, keepdims=True)
    var = ((ref - mu) ** 2).mean(-1, keepdims=True)
    ref = (ref - mu) * jax.lax.rsqrt(var + eps) * gamma + beta
    assert out.shape == (B, S, H)
    assert jnp.allclose(out, ref, atol=1e-5, rtol=1e-5)

    print("KERNEL_OK")
</pallas_src>

<mosaic_0001>
module attributes {stable_mosaic.version = 11 : i64} {
  func.func @bert_embeddings_kernel(%arg0: i32, %arg1: memref<16x16xf32, #tpu.memory_space<vmem>>, %arg2: memref<128x16xf32, #tpu.memory_space<vmem>>, %arg3: memref<3x128xf32, #tpu.memory_space<vmem>>, %arg4: memref<16x128xf32, #tpu.memory_space<vmem>>) attributes {dimension_semantics = [#tpu.dimension_semantics<parallel>], iteration_bounds = array<i64: 1>, scalar_prefetch = 0 : i64, scratch_operands = 0 : i64, tpu.core_type = #tpu.core_type<tc>, window_params = [{transform_indices = @transform_0, window_bounds = array<i64: 16, 16>}, {pipeline_mode = #tpu.pipeline_mode<synchronous>, transform_indices = @transform_1, window_bounds = array<i64: 128, 16>}, {pipeline_mode = #tpu.pipeline_mode<synchronous>, transform_indices = @transform_2, window_bounds = array<i64: 3, 128>}, {transform_indices = @transform_3, window_bounds = array<i64: 16, 128>}]} {
    %c0 = arith.constant 0 : index
    %c0_0 = arith.constant 0 : index
    %0 = vector.load %arg1[%c0, %c0_0] : memref<16x16xf32, #tpu.memory_space<vmem>>, vector<16x16xf32>
    %c0_1 = arith.constant 0 : index
    %c0_2 = arith.constant 0 : index
    %1 = vector.load %arg2[%c0_1, %c0_2] : memref<128x16xf32, #tpu.memory_space<vmem>>, vector<128x16xf32>
    %cst = arith.constant dense<0.000000e+00> : vector<16x128xf32>
    %2 = tpu.matmul %0, %1, %cst {dimension_numbers = #tpu.dot_dimension_numbers<[1], [1], [0], [0], [0, 0, 1, 0], [], []>} : vector<16x16xf32>, vector<128x16xf32>, vector<16x128xf32> -> vector<16x128xf32>
    %c0_3 = arith.constant 0 : index
    %c0_4 = arith.constant 0 : index
    %3 = vector.load %arg3[%c0_3, %c0_4] : memref<3x128xf32, #tpu.memory_space<vmem>>, vector<1x128xf32>
    %4 = vector.broadcast %3 : vector<1x128xf32> to vector<16x128xf32>
    %5 = arith.addf %2, %4 : vector<16x128xf32>
    %6 = tpu.iota {dimensions = array<i32: 1>} : vector<1x128xi32>
    %c32_i32 = arith.constant 32 : i32
    %7 = vector.broadcast %c32_i32 : i32 to vector<1x128xi32>
    %8 = arith.cmpi slt, %6, %7 : vector<1x128xi32>
    %9 = arith.extui %8 : vector<1x128xi1> to vector<1x128xi32>
    %10 = arith.sitofp %9 : vector<1x128xi32> to vector<1x128xf32>
    %cst_5 = arith.constant dense<0.000000e+00> : vector<16xf32>
    %11 = vector.multi_reduction <add>, %5, %cst_5 [1] : vector<16x128xf32> to vector<16xf32>
    %12 = vector.shape_cast %11 : vector<16xf32> to vector<16x1xf32>
    %cst_6 = arith.constant 3.125000e-02 : f32
    %13 = vector.broadcast %cst_6 : f32 to vector<16x1xf32>
    %14 = arith.mulf %12, %13 : vector<16x1xf32>
    %15 = vector.broadcast %14 : vector<16x1xf32> to vector<16x128xf32>
    %16 = arith.subf %5, %15 : vector<16x128xf32>
    %17 = vector.broadcast %10 : vector<1x128xf32> to vector<16x128xf32>
    %18 = arith.mulf %16, %17 : vector<16x128xf32>
    %19 = arith.mulf %18, %18 : vector<16x128xf32>
    %cst_7 = arith.constant dense<0.000000e+00> : vector<16xf32>
    %20 = vector.multi_reduction <add>, %19, %cst_7 [1] : vector<16x128xf32> to vector<16xf32>
    %21 = vector.shape_cast %20 : vector<16xf32> to vector<16x1xf32>
    %cst_8 = arith.constant 3.125000e-02 : f32
    %22 = vector.broadcast %cst_8 : f32 to vector<16x1xf32>
    %23 = arith.mulf %21, %22 : vector<16x1xf32>
    %cst_9 = arith.constant 9.99999996E-13 : f32
    %24 = vector.broadcast %cst_9 : f32 to vector<16x1xf32>
    %25 = arith.addf %23, %24 : vector<16x1xf32>
    %26 = math.rsqrt %25 : vector<16x1xf32>
    %27 = vector.broadcast %26 : vector<16x1xf32> to vector<16x128xf32>
    %28 = arith.mulf %18, %27 : vector<16x128xf32>
    %c1 = arith.constant 1 : index
    %c0_10 = arith.constant 0 : index
    %29 = vector.load %arg3[%c1, %c0_10] : memref<3x128xf32, #tpu.memory_space<vmem>>, vector<1x128xf32>
    %30 = vector.broadcast %29 : vector<1x128xf32> to vector<16x128xf32>
    %31 = arith.mulf %28, %30 : vector<16x128xf32>
    %c2 = arith.constant 2 : index
    %c0_11 = arith.constant 0 : index
    %32 = vector.load %arg3[%c2, %c0_11] : memref<3x128xf32, #tpu.memory_space<vmem>>, vector<1x128xf32>
    %33 = vector.broadcast %32 : vector<1x128xf32> to vector<16x128xf32>
    %34 = arith.addf %31, %33 : vector<16x128xf32>
    %c0_12 = arith.constant 0 : index
    %c0_13 = arith.constant 0 : index
    %35 = vector.load %arg4[%c0_12, %c0_13] : memref<16x128xf32, #tpu.memory_space<vmem>>, vector<16x128xf32>
    tpu.vector_store %arg4[%c0_12, %c0_13], %34 {strides = array<i32>} : memref<16x128xf32, #tpu.memory_space<vmem>>, vector<16x128xf32>,
    return
  }
  func.func @transform_0(%arg0: i32) -> (i32, i32) {
    %c0_i32 = arith.constant 0 : i32
    %c0_i32_0 = arith.constant 0 : i32
    return %arg0, %c0_i32 : i32, i32
  }
  func.func @transform_1(%arg0: i32) -> (i32, i32) {
    %c0_i32 = arith.constant 0 : i32
    %c0_i32_0 = arith.constant 0 : i32
    %c0_i32_1 = arith.constant 0 : i32
    return %c0_i32, %c0_i32_0 : i32, i32
  }
  func.func @transform_2(%arg0: i32) -> (i32, i32) {
    %c0_i32 = arith.constant 0 : i32
    %c0_i32_0 = arith.constant 0 : i32
    %c0_i32_1 = arith.constant 0 : i32
    return %c0_i32, %c0_i32_0 : i32, i32
  }
  func.func @transform_3(%arg0: i32) -> (i32, i32) {
    %c0_i32 = arith.constant 0 : i32
    %c0_i32_0 = arith.constant 0 : i32
    return %arg0, %c0_i32 : i32, i32
  }
}

</mosaic_0001>

<bundles_post_ra>
// kernel: tpu_custom_call.1
= control target key start
LH: loop header
LB: loop body
LE: loop exit
PB: predicated region body
PF: predicated region fallthrough
CT: control target
= control target key end

     0   :  { %vm35_vm0 = vcmask 130048   ;;  %s384_s0 = inlined_call_operand.vmem [shape: f32[16,16], index: 0, kind: input, shape index: {}]   ;;  %s385_s1 = inlined_call_operand.vmem [shape: f32[128,16], index: 1, kind: input, shape index: {}]   ;;  %s386_s2 = inlined_call_operand.vmem [shape: f32[3,128], index: 2, kind: input, shape index: {}]   ;;  %s387_s3 = inlined_call_operand.hbm [shape: f32[16,128], index: 3, kind: output, shape index: {}]  }
   0x1   :  { %v32_v0 = vld [vmem:[%s385_s1 + $0x78] sm:$0xff]  ;;  %v31_v1 = vld [vmem:[%s385_s1 + $0x70] sm:$0xff] }
   0x2   :  { %188 = vmatpush.xpose.msk.msra.mxu0 %vm35_vm0, %v32_v0  ;;  %207 = vmatpush.xpose.msk.msra.mxu1 %vm35_vm0, %v32_v0 }
   0x3   :  { %8 = vsyncpa [#allocation3], 0  ;;  %v30_v2 = vld [vmem:[%s385_s1 + $0x68] sm:$0xff]  ;;  %v29_v3 = vld [vmem:[%s385_s1 + $0x60] sm:$0xff]  ;;  %v113_v23 = vlaneseq  ;;  %v260_v27 = vmov 0.0   ;;  %s261_s25 = smov [#allocation2]  }
   0x4   :  { %v28_v4 = vld [vmem:[%s385_s1 + $0x58] sm:$0xff]  ;;  %v27_v5 = vld [vmem:[%s385_s1 + $0x50] sm:$0xff]  ;;  %v26_v6 = vld [vmem:[%s385_s1 + $0x48] sm:$0xff]  ;;  %s174_s26 = sshll.u32 %s261_s25, 4  ;;  %s176_s29 = sshll.u32 %s387_s3, 4  ;;  %s175_s26 = int_to_ptr.vmem [resolvable:$true] %s174_s26  ;;  %s177_s29 = int_to_ptr.hbm [resolvable:$true] %s176_s29 }
   0x5   :  { %v25_v7 = vld [vmem:[%s385_s1 + $0x40] sm:$0xff]  ;;  %v24_v8 = vld [vmem:[%s385_s1 + $0x38] sm:$0xff]  ;;  %v23_v9 = vld [vmem:[%s385_s1 + $0x30] sm:$0xff]  ;;  %v114_v24 = vand.u32 127, %v113_v23  ;;  %s263_s30 = smov 8  }
   0x6   :  { %189 = vmatpush.xpose.msk.msra.mxu0 %vm35_vm0, %v31_v1  ;;  %208 = vmatpush.xpose.msk.msra.mxu1 %vm35_vm0, %v31_v1  ;;  %v22_v10 = vld [vmem:[%s385_s1 + $0x28] sm:$0xff]  ;;  %v21_v11 = vld [vmem:[%s385_s1 + $0x20] sm:$0xff]  ;;  %v20_v12 = vld [vmem:[%s385_s1 + $0x18] sm:$0xff] }
   0x7   :  { %v19_v13 = vld [vmem:[%s385_s1 + $0x10] sm:$0xff]  ;;  %v18_v14 = vld [vmem:[%s385_s1 + $0x8] sm:$0xff]  ;;  %v17_v15 = vld [vmem:[%s385_s1] sm:$0xff]  ;;  %vm115_vm1 = vcmp.lt.s32.totalorder %v114_v24, 32 }
   0x8   :  { %v15_v16 = vld [vmem:[%s384_s0] sm:$0xff]  ;;  %v16_v17 = vld [vmem:[%s384_s0 + $0x8] sm:$0xff]  ;;  %v206_v28 = vsel %vm115_vm1, 1.0, %v260_v27 }
   0x9   :  { %v227_v18 = vld [vmem:[%s386_s2] ss:$0 sm:$0xff]  ;;  %v228_v51 = vld [vmem:[%s386_s2 + $0x1] ss:$0 sm:$0xff]  ;;  %v229_v55 = vld [vmem:[%s386_s2 + $0x2] ss:$0 sm:$0xff] }
   0xa   :  { %190 = vmatpush.xpose.msk.msra.mxu0 %vm35_vm0, %v30_v2  ;;  %209 = vmatpush.xpose.msk.msra.mxu1 %vm35_vm0, %v30_v2  ;;  %s262_s2 = smov 128  }
   0xe   :  { %191 = vmatpush.xpose.msk.msra.mxu0 %vm35_vm0, %v29_v3  ;;  %210 = vmatpush.xpose.msk.msra.mxu1 %vm35_vm0, %v29_v3 }
  0x12   :  { %192 = vmatpush.xpose.msk.msra.mxu0 %vm35_vm0, %v28_v4  ;;  %211 = vmatpush.xpose.msk.msra.mxu1 %vm35_vm0, %v28_v4 }
  0x16   :  { %193 = vmatpush.xpose.msk.msra.mxu0 %vm35_vm0, %v27_v5  ;;  %212 = vmatpush.xpose.msk.msra.mxu1 %vm35_vm0, %v27_v5 }
  0x1a   :  { %194 = vmatpush.xpose.msk.msra.mxu0 %vm35_vm0, %v26_v6  ;;  %213 = vmatpush.xpose.msk.msra.mxu1 %vm35_vm0, %v26_v6 }
  0x1e   :  { %195 = vmatpush.xpose.msk.msra.mxu0 %vm35_vm0, %v25_v7  ;;  %214 = vmatpush.xpose.msk.msra.mxu1 %vm35_vm0, %v25_v7 }
  0x22   :  { %196 = vmatpush.xpose.msk.msra.mxu0 %vm35_vm0, %v24_v8  ;;  %215 = vmatpush.xpose.msk.msra.mxu1 %vm35_vm0, %v24_v8 }
  0x26   :  { %197 = vmatpush.xpose.msk.msra.mxu0 %vm35_vm0, %v23_v9  ;;  %216 = vmatpush.xpose.msk.msra.mxu1 %vm35_vm0, %v23_v9 }
  0x2a   :  { %198 = vmatpush.xpose.msk.msra.mxu0 %vm35_vm0, %v22_v10  ;;  %217 = vmatpush.xpose.msk.msra.mxu1 %vm35_vm0, %v22_v10 }
  0x2e   :  { %199 = vmatpush.xpose.msk.msra.mxu0 %vm35_vm0, %v21_v11  ;;  %218 = vmatpush.xpose.msk.msra.mxu1 %vm35_vm0, %v21_v11 }
  0x32   :  { %200 = vmatpush.xpose.msk.msra.mxu0 %vm35_vm0, %v20_v12  ;;  %219 = vmatpush.xpose.msk.msra.mxu1 %vm35_vm0, %v20_v12 }
  0x36   :  { %201 = vmatpush.xpose.msk.msra.mxu0 %vm35_vm0, %v19_v13  ;;  %220 = vmatpush.xpose.msk.msra.mxu1 %vm35_vm0, %v19_v13 }
  0x3a   :  { %202 = vmatpush.xpose.msk.msra.mxu0 %vm35_vm0, %v18_v14  ;;  %221 = vmatpush.xpose.msk.msra.mxu1 %vm35_vm0, %v18_v14 }
  0x3e   :  { %203 = vmatpush.xpose.msk.msra.mxu0 %vm35_vm0, %v17_v15  ;;  %222 = vmatpush.xpose.msk.msra.mxu1 %vm35_vm0, %v17_v15 }
  0x41   :  { %204 = vmatmul.msk.f32.vlgmr.msra.gmra.mxu0 %vm35_vm0, %v15_v16  ;;  %205 = vmatmul.msk.f32.vlgmr.msra.gmra.mxu1 %vm35_vm0, %v16_v17 }
  0xbe   :  { %v107_v19 = vpop.f32.mrf.mxu0  ;;  %v110_v21 = vpop.f32.mrf.mxu1 }
  0xbf   :  { %v108_v20 = vadd.f32 %v227_v18, %v107_v19  ;;  %v111_v22 = vadd.f32 %v227_v18, %v110_v21 }
  0xc1   :  { %118 = vadd.xlane.f32.xlu0 %v108_v20 }
  0xc9   :  { %120 = vadd.xlane.f32.xlu0 %v111_v22 }
 0x134   :  { %v119_v25 = vpop.xlane.xlu0 %118 }
 0x135   :  { %v122_v26 = vmul.f32 0.03125, %v119_v25 }
 0x137   :  { %v124_v29 = vsub.f32 %v108_v20, %v122_v26 }
 0x139   :  { %v126_v30 = vmul.f32 %v206_v28, %v124_v29 }
 0x13b   :  { %v128_v31 = vmul.f32 %v126_v30, %v126_v30 }
 0x13c   :  { %v121_v32 = vpop.xlane.xlu0 %120 }
 0x13d   :  { %v123_v33 = vmul.f32 0.03125, %v121_v32  ;;  %130 = vadd.xlane.f32.xlu1 %v128_v31 }
 0x13f   :  { %v125_v34 = vsub.f32 %v111_v22, %v123_v33 }
 0x141   :  { %v127_v35 = vmul.f32 %v206_v28, %v125_v34 }
 0x143   :  { %v129_v36 = vmul.f32 %v127_v35, %v127_v35 }
 0x145   :  { %132 = vadd.xlane.f32.xlu1 %v129_v36 }
 0x1b0   :  { %v131_v37 = vpop.xlane.xlu1 %130 }
 0x1b1   :  { %v134_v38 = vmul.f32 0.03125, %v131_v37 }
 0x1b3   :  { %v136_v39 = vadd.f32 1e-12, %v134_v38 }
 0x1b5   :  { %230 = vrsqrt.f32 %v136_v39  ;;  %vm144_vm3 = vweird.f32 %v136_v39 }
 0x1b8   :  { %v133_v40 = vpop.xlane.xlu1 %132 }
 0x1b9   :  { %v135_v41 = vmul.f32 0.03125, %v133_v40 }
 0x1bb   :  { %v231_v42 = vpop.eup %230  ;;  %v137_v43 = vadd.f32 1e-12, %v135_v41 }
 0x1bc   :  { %v139_v44 = vmul.f32 %v231_v42, %v136_v39  ;;  %vm145_vm2 = vweird.f32 %v231_v42 }
 0x1bd   :  { %232 = vrsqrt.f32 %v137_v43  ;;  %vm146_vm4 = vmor %vm144_vm3, %vm145_vm2  ;;  %vm154_vm6 = vweird.f32 %v137_v43 }
 0x1be   :  { %v140_v45 = vmul.f32 %v231_v42, %v139_v44 }
 0x1c0   :  { %v141_v46 = vmul.f32 0.5, %v140_v45 }
 0x1c2   :  { %v142_v47 = vsub.f32 1.5, %v141_v46 }
 0x1c3   :  { %v233_v48 = vpop.eup %232 }
 0x1c4   :  { %v143_v49 = vmul.f32 %v231_v42, %v142_v47  ;;  %v149_v50 = vmul.f32 %v233_v48, %v137_v43  ;;  %vm155_vm5 = vweird.f32 %v233_v48 }
 0x1c5   :  { %vm156_vm7 = vmor %vm154_vm6, %vm155_vm5 }
 0x1c6   :  { %v147_v52 = vsel %vm146_vm4, %v231_v42, %v143_v49  ;;  %v150_v53 = vmul.f32 %v233_v48, %v149_v50 }
 0x1c7   :  { %v158_v54 = vmul.f32 %v147_v52, %v126_v30 }
 0x1c8   :  { %v151_v56 = vmul.f32 0.5, %v150_v53 }
 0x1c9   :  { %v162_v57 = vmul.f32 %v228_v51, %v158_v54 }
 0x1ca   :  { %v152_v58 = vsub.f32 1.5, %v151_v56 }
 0x1cb   :  { %v166_v59 = vadd.f32 %v229_v55, %v162_v57 }
 0x1cc   :  { %v153_v60 = vmul.f32 %v233_v48, %v152_v58 }
 0x1cd   :  { %168 = vst [vmem:[#allocation2] sm:$0xff] %v166_v59 }
 0x1ce   :  { %v157_v61 = vsel %vm156_vm7, %v233_v48, %v153_v60 }
 0x1cf   :  { %v159_v62 = vmul.f32 %v157_v61, %v127_v35 }
 0x1d1   :  { %v163_v63 = vmul.f32 %v228_v51, %v159_v62 }
 0x1d3   :  { %v167_v0 = vadd.f32 %v229_v55, %v163_v63 }
 0x1d5   :  { %169 = vst [vmem:[#allocation2 + $0x8] sm:$0xff] %v167_v0 }
 0x1d6   :  { %182 = dma.vmem_to_hbm [thread:$0]  %s175_s26, 256, %s177_s29, [#allocation3], %s262_s2, %s262_s2, %s263_s30  }
 0x1d7   :  { %258 = dma.done.wait [#allocation3], 256  }
 0x1d8   :  { %259 = vsyncadd [#allocation3], 4294967040 }
 0x1d9   :  { %187 = vsyncpa [#allocation3], 1 }

</bundles_post_ra>
